<compile_context>
chip_gen: v7x
topology: tpu7x:2x2x1
jax: 0.10.0
libtpu: 0.0.40
codegen_flags: <defaults>
</compile_context>

<pallas_src>
import functools

import jax
import jax.numpy as jnp
from jax import lax
from jax.experimental import pallas as pl
from jax.experimental.pallas import tpu as pltpu

LANE = 128            # TPU lane width (last dim)
MAX_ROW_BLOCK = 8192  # rows per grid step: 8192*128*4B = 4 MiB per f32 input block
ACC_ROWS_MAX = 64     # resident per-core accumulator height (8 independent vreg chains)
NUM_CORES = 2         # leading "parallel" axis (megacore sharding; no-op on 1-TC chips)
# TODO(synk): on v7x, drive the leading axis with pltpu.CORE_PARALLEL (or core_map)
# to guarantee the 2-TensorCore split; kept at "parallel" here because CORE_PARALLEL
# with a fixed size-2 axis is not guaranteed to compile on 1-TC generations.


def _mse_kernel(pred_ref, tgt_ref, out_ref, *, rows, row_block, acc_rows,
                blocks_per_core, num_blocks, needs_mask):
    c = pl.program_id(0)   # core / parallel axis
    i = pl.program_id(1)   # streaming reduction axis

    # This core's (acc_rows,128) partial-sum slab lives in the resident output
    # block; zero it on the first inner step.
    @pl.when(i == 0)
    def _():
        out_ref[...] = jnp.zeros_like(out_ref)

    d = pred_ref[...].astype(jnp.float32) - tgt_ref[...].astype(jnp.float32)
    sq = d * d

    def _accumulate(vals):
        # Fold (row_block,128) -> (acc_rows,128) with independent VPU add
        # chains; the expensive cross-lane reduce is deferred to the wrapper.
        out_ref[...] += jnp.sum(
            vals.reshape(row_block // acc_rows, acc_rows, LANE), axis=0)

    if not needs_mask:
        _accumulate(sq)
    else:
        # Only the last (potentially partial) block and clamped overflow blocks
        # pay the mask; every other step takes the mask-free fast path.
        blk = c * blocks_per_core + i
        is_edge = blk >= (num_blocks - 1)

        @pl.when(jnp.logical_not(is_edge))
        def _():
            _accumulate(sq)

        @pl.when(is_edge)
        def _():
            row_start = blk * row_block
            row_idx = row_start + lax.broadcasted_iota(
                jnp.int32, (row_block, LANE), 0)
            _accumulate(jnp.where(row_idx < rows, sq, 0.0))


def _round_up(x, m):
    return (x + m - 1) // m * m


def mse_loss(pred, target):
    assert pred.shape == target.shape, "pred/target shape mismatch"
    n = int(pred.size)
    if n == 0:
        return jnp.float32(float("nan"))  # matches F.mse_loss on empty input

    p_flat = pred.reshape(-1)
    t_flat = target.reshape(-1)

    # Ragged tail (< 128 elements): reduce it with plain JAX instead of padding
    # both inputs (padding would cost an extra full HBM read+write pass).
    rem = n % LANE
    n_main = n - rem
    tail_sse = jnp.float32(0.0)
    if rem:
        d_tail = (p_flat[n_main:].astype(jnp.float32)
                  - t_flat[n_main:].astype(jnp.float32))
        tail_sse = jnp.sum(d_tail * d_tail)
        if n_main == 0:
            return tail_sse / jnp.float32(n)
        p_flat = p_flat[:n_main]
        t_flat = t_flat[:n_main]

    rows = n_main // LANE
    p2 = p_flat.reshape(rows, LANE)
    t2 = t_flat.reshape(rows, LANE)

    # Sublane packing for the (narrowest) input dtype: f32 -> 8, bf16 -> 16,
    # 8-bit -> 32.  Keeps the input block shapes layout-legal while casting
    # inside the kernel (so narrow dtypes keep their HBM-traffic saving).
    itemsize = min(jnp.dtype(p2.dtype).itemsize, jnp.dtype(t2.dtype).itemsize)
    packing = max(8, 32 // max(1, itemsize))

    # Resident accumulator height: multiple of the packing (and hence of the
    # f32 sublane tile 8), capped at ACC_ROWS_MAX.
    acc_rows = min(ACC_ROWS_MAX, _round_up(rows, packing))

    # Big, VMEM-friendly row blocks (always a multiple of acc_rows).
    row_block = min(MAX_ROW_BLOCK, _round_up(rows, acc_rows))

    num_blocks = pl.cdiv(rows, row_block)
    num_cores = min(NUM_CORES, num_blocks)
    blocks_per_core = pl.cdiv(num_blocks, num_cores)
    grid = (num_cores, blocks_per_core)

    # Compile the mask path out entirely when the tiling is exact (common case).
    needs_mask = (rows % row_block != 0) or (num_blocks % num_cores != 0)

    def in_index_map(c, i):
        # Clamp grid points that fall past the last block; their contribution
        # is zeroed by the in-kernel edge mask.
        blk = jnp.minimum(c * blocks_per_core + i, num_blocks - 1)
        return (blk, 0)

    # Explicit scoped-VMEM limit: 2 inputs x 2 pipeline buffers of row_block
    # rows can exceed v5e's 16 MiB default; physical VMEM is far larger.
    in_block_bytes = row_block * LANE * (p2.dtype.itemsize + t2.dtype.itemsize)
    vmem_limit = int(min(96 << 20, max(32 << 20, 2 * in_block_bytes + (8 << 20))))

    out_bytes = num_cores * acc_rows * LANE * 4
    cost = pl.CostEstimate(
        flops=3 * n_main,            # sub + mul + add per element
        transcendentals=0,
        bytes_accessed=int(p2.size * p2.dtype.itemsize
                           + t2.size * t2.dtype.itemsize + out_bytes),
    )

    partials = pl.pallas_call(
        functools.partial(
            _mse_kernel,
            rows=rows,
            row_block=row_block,
            acc_rows=acc_rows,
            blocks_per_core=blocks_per_core,
            num_blocks=num_blocks,
            needs_mask=needs_mask,
        ),
        out_shape=jax.ShapeDtypeStruct((num_cores * acc_rows, LANE), jnp.float32),
        grid_spec=pltpu.PrefetchScalarGridSpec(
            num_scalar_prefetch=0,
            grid=grid,
            in_specs=[
                pl.BlockSpec((row_block, LANE), in_index_map),
                pl.BlockSpec((row_block, LANE), in_index_map),
            ],
            out_specs=pl.BlockSpec((acc_rows, LANE), lambda c, i: (c, 0)),
        ),
        compiler_params=pltpu.CompilerParams(
            dimension_semantics=("parallel", "arbitrary"),
            vmem_limit_bytes=vmem_limit,
        ),
        cost_estimate=cost,
    )(p2, t2)

    # Tiny final cross-lane reduction + mean over the true element count.
    return (jnp.sum(partials) + tail_sse) / jnp.float32(n)


if __name__ == "__main__":
    key = jax.random.PRNGKey(0)
    k1, k2, k3, k4, k5, k6 = jax.random.split(key, 6)

    # Small NCHW-like prediction / target tensors (forward is shape-agnostic).
    pred = jax.random.normal(k1, (2, 4, 16, 16), dtype=jnp.float32)
    target = jax.random.normal(k2, (2, 4, 16, 16), dtype=jnp.float32)
    loss = mse_loss(pred, target)
    jax.block_until_ready(loss)
    ref = jnp.mean((pred - target) ** 2)
    assert jnp.allclose(loss, ref, rtol=1e-5, atol=1e-6), (loss, ref)

    # Larger slab exercising the big row-block streaming path.
    pred2 = jax.random.normal(k3, (8, 8, 128, 128), dtype=jnp.float32)
    target2 = jax.random.normal(k4, (8, 8, 128, 128), dtype=jnp.float32)
    loss2 = mse_loss(pred2, target2)
    jax.block_until_ready(loss2)
    ref2 = jnp.mean((pred2 - target2) ** 2)
    assert jnp.allclose(loss2, ref2, rtol=1e-4, atol=1e-6), (loss2, ref2)

    # Ragged element count (n % 128 != 0): masked edge block + plain-JAX tail.
    pred3 = jax.random.normal(k5, (3, 5, 37, 41), dtype=jnp.float32)
    target3 = jax.random.normal(k6, (3, 5, 37, 41), dtype=jnp.float32)
    loss3 = mse_loss(pred3, target3)
    jax.block_until_ready(loss3)
    ref3 = jnp.mean((pred3 - target3) ** 2)
    assert jnp.allclose(loss3, ref3, rtol=1e-4, atol=1e-6), (loss3, ref3)

    # bf16 inputs exercising dtype-aware sublane packing (cast happens in-kernel).
    pred4 = jax.random.normal(k1, (2, 4, 16, 16), dtype=jnp.bfloat16)
    target4 = jax.random.normal(k2, (2, 4, 16, 16), dtype=jnp.bfloat16)
    loss4 = mse_loss(pred4, target4)
    jax.block_until_ready(loss4)
    ref4 = jnp.mean((pred4.astype(jnp.float32) - target4.astype(jnp.float32)) ** 2)
    assert jnp.allclose(loss4, ref4, rtol=1e-3, atol=1e-5), (loss4, ref4)

    print("KERNEL_OK")
</pallas_src>

<mosaic_0001>
module attributes {stable_mosaic.version = 11 : i64} {
  func.func @_mse_kernel(%arg0: i32, %arg1: i32, %arg2: memref<16x128xf32, #tpu.memory_space<vmem>>, %arg3: memref<16x128xf32, #tpu.memory_space<vmem>>, %arg4: memref<16x128xf32, #tpu.memory_space<vmem>>) attributes {dimension_semantics = [#tpu.dimension_semantics<parallel>, #tpu.dimension_semantics<arbitrary>], iteration_bounds = array<i64: 1, 1>, scalar_prefetch = 0 : i64, scratch_operands = 0 : i64, tpu.core_type = #tpu.core_type<tc>, window_params = [{transform_indices = @transform_0, window_bounds = array<i64: 16, 128>}, {transform_indices = @transform_1, window_bounds = array<i64: 16, 128>}, {transform_indices = @transform_2, window_bounds = array<i64: 16, 128>}]} {
    %c0_i32 = arith.constant 0 : i32
    %0 = arith.cmpi eq, %arg1, %c0_i32 : i32
    %1 = arith.extui %0 : i1 to i32
    %c0_i32_0 = arith.constant 0 : i32
    %2 = arith.cmpi ne, %1, %c0_i32_0 : i32
    scf.if %2 {
      %cst_8 = arith.constant 0.000000e+00 : f32
      %12 = vector.broadcast %cst_8 : f32 to vector<16x128xf32>
      %c0_9 = arith.constant 0 : index
      %c0_10 = arith.constant 0 : index
      %13 = vector.load %arg4[%c0_9, %c0_10] : memref<16x128xf32, #tpu.memory_space<vmem>>, vector<16x128xf32>
      tpu.vector_store %arg4[%c0_9, %c0_10], %12 {strides = array<i32>} : memref<16x128xf32, #tpu.memory_space<vmem>>, vector<16x128xf32>,
    } else {
    }
    %c0 = arith.constant 0 : index
    %c0_1 = arith.constant 0 : index
    %3 = vector.load %arg2[%c0, %c0_1] : memref<16x128xf32, #tpu.memory_space<vmem>>, vector<16x128xf32>
    %c0_2 = arith.constant 0 : index
    %c0_3 = arith.constant 0 : index
    %4 = vector.load %arg3[%c0_2, %c0_3] : memref<16x128xf32, #tpu.memory_space<vmem>>, vector<16x128xf32>
    %5 = arith.subf %3, %4 : vector<16x128xf32>
    %6 = arith.mulf %5, %5 : vector<16x128xf32>
    %c0_4 = arith.constant 0 : index
    %c0_5 = arith.constant 0 : index
    %7 = vector.load %arg4[%c0_4, %c0_5] : memref<16x128xf32, #tpu.memory_space<vmem>>, vector<16x128xf32>
    %8 = vector.shape_cast %6 : vector<16x128xf32> to vector<1x16x128xf32>
    %cst = arith.constant dense<0.000000e+00> : vector<16x128xf32>
    %9 = vector.multi_reduction <add>, %8, %cst [0] : vector<1x16x128xf32> to vector<16x128xf32>
    %10 = arith.addf %7, %9 : vector<16x128xf32>
    %c0_6 = arith.constant 0 : index
    %c0_7 = arith.constant 0 : index
    %11 = vector.load %arg4[%c0_6, %c0_7] : memref<16x128xf32, #tpu.memory_space<vmem>>, vector<16x128xf32>
    tpu.vector_store %arg4[%c0_6, %c0_7], %10 {strides = array<i32>} : memref<16x128xf32, #tpu.memory_space<vmem>>, vector<16x128xf32>,
    return
  }
  func.func @transform_0(%arg0: i32, %arg1: i32) -> (i32, i32) {
    %c1_i32 = arith.constant 1 : i32
    %0 = arith.muli %arg0, %c1_i32 : i32
    %1 = arith.addi %0, %arg1 : i32
    %c0_i32 = arith.constant 0 : i32
    %2 = arith.minsi %1, %c0_i32 : i32
    %c0_i32_0 = arith.constant 0 : i32
    %c0_i32_1 = arith.constant 0 : i32
    return %2, %c0_i32_0 : i32, i32
  }
  func.func @transform_1(%arg0: i32, %arg1: i32) -> (i32, i32) {
    %c1_i32 = arith.constant 1 : i32
    %0 = arith.muli %arg0, %c1_i32 : i32
    %1 = arith.addi %0, %arg1 : i32
    %c0_i32 = arith.constant 0 : i32
    %2 = arith.minsi %1, %c0_i32 : i32
    %c0_i32_0 = arith.constant 0 : i32
    %c0_i32_1 = arith.constant 0 : i32
    return %2, %c0_i32_0 : i32, i32
  }
  func.func @transform_2(%arg0: i32, %arg1: i32) -> (i32, i32) {
    %c0_i32 = arith.constant 0 : i32
    %c0_i32_0 = arith.constant 0 : i32
    return %arg0, %c0_i32 : i32, i32
  }
}

</mosaic_0001>

<bundles_post_ra>
// kernel: tpu_custom_call.1
= control target key start
LH: loop header
LB: loop body
LE: loop exit
PB: predicated region body
PF: predicated region fallthrough
CT: control target
= control target key end

     0   :  { %7 = vsyncpa [#allocation3], 0  ;;  %s247_s0 = inlined_call_operand.hbm [shape: f32[16,128], index: 0, kind: input, shape index: {}]   ;;  %s248_s1 = inlined_call_operand.hbm [shape: f32[16,128], index: 1, kind: input, shape index: {}]   ;;  %s249_s2 = inlined_call_operand.hbm [shape: f32[16,128], index: 2, kind: output, shape index: {}]  }
   0x1   :  { %8 = vsyncpa [#allocation6], 0 }
   0x2   :  { %9 = vsyncpa [#allocation4], 0  ;;  %s182_s9 = smov [#allocation2]   ;;  %s110_s13 = scalar_lea.hbm %s247_s0, 256 }
   0x3   :  { %s21_s10 = sshll.u32 %s182_s9, 4  ;;  %p111_p0 = scmp.ne.s32.totalorder %s247_s0, %s110_s13  ;;  %s22_s10 = int_to_ptr.vmem [resolvable:$true] %s21_s10 }
   0x4   :  { %p114_p1 = scmp.lt.u32.totalorder %s110_s13, %s247_s0 }
   0x6   :  { %p116_p2 = pnand %p114_p1, %p111_p0 }
   0x8   :  { %119 = shalt.err (!%p116_p2)
}
   0x9   :  { %s120_s18 = scalar_lea.vmem %s22_s10, 256  ;;  %p125_p4 = scmp.lt.s32.totalorder %s22_s10, %s22_s10 }
   0xa   :  { %p121_p3 = scmp.ne.s32.totalorder %s22_s10, %s120_s18  ;;  %p126_p5 = scmp.lt.s32.totalorder %s120_s18, %s120_s18 }
   0xc   :  { %p127_p6 = por %p126_p5, %p125_p4 }
   0xe   :  { %p128_p7 = pnand %p127_p6, %p121_p3 }
  0x10   :  { %131 = shalt.err (!%p128_p7)
}
  0x11   :  { %s183_s19 = smov 128   ;;  %s184_s20 = smov 8  }
  0x12   :  { %27 = dma.hbm_to_vmem [thread:$0]  %s247_s0, 256, %s22_s10, [#allocation3], %s183_s19, %s183_s19, %s184_s20  }
  0x13   :  { %s185_s23 = smov [#allocation5]   ;;  %s132_s27 = scalar_lea.hbm %s248_s1, 256 }
  0x14   :  { %s39_s24 = sshll.u32 %s185_s23, 4  ;;  %p133_p8 = scmp.ne.s32.totalorder %s248_s1, %s132_s27  ;;  %s40_s24 = int_to_ptr.vmem [resolvable:$true] %s39_s24 }
  0x15   :  { %p136_p9 = scmp.lt.u32.totalorder %s132_s27, %s248_s1 }
  0x17   :  { %p138_p10 = pnand %p136_p9, %p133_p8 }
  0x19   :  { %141 = shalt.err (!%p138_p10)
}
  0x1a   :  { %s142_s4 = scalar_lea.vmem %s40_s24, 256  ;;  %p147_p12 = scmp.lt.s32.totalorder %s40_s24, %s40_s24 }
  0x1b   :  { %p143_p11 = scmp.ne.s32.totalorder %s40_s24, %s142_s4  ;;  %p148_p13 = scmp.lt.s32.totalorder %s142_s4, %s142_s4 }
  0x1d   :  { %p149_p0 = por %p148_p13, %p147_p12 }
  0x1f   :  { %p150_p1 = pnand %p149_p0, %p143_p11 }
  0x21   :  { %153 = shalt.err (!%p150_p1)
}
  0x22   :  { %45 = dma.hbm_to_vmem [thread:$0]  %s248_s1, 256, %s40_s24, [#allocation6], %s183_s19, %s183_s19, %s184_s20  }
  0x23   :  { %176 = dma.done.wait [#allocation3], 256  }
  0x24   :  { %177 = vsyncadd [#allocation3], 4294967040 }
  0x25   :  { %178 = dma.done.wait [#allocation6], 256  }
  0x26   :  { %179 = vsyncadd [#allocation6], 4294967040  ;;  %v66_v0 = vld [vmem:[#allocation2] sm:$0xff]  ;;  %v68_v1 = vld [vmem:[#allocation5] sm:$0xff]  ;;  %s186_s6 = smov [#allocation7]  }
  0x27   :  { %v67_v2 = vld [vmem:[#allocation2 + $0x8] sm:$0xff]  ;;  %v70_v3 = vsub.f32 %v66_v0, %v68_v1  ;;  %v69_v4 = vld [vmem:[#allocation5 + $0x8] sm:$0xff]  ;;  %s87_s7 = sshll.u32 %s186_s6, 4  ;;  %s88_s7 = int_to_ptr.vmem [resolvable:$true] %s87_s7 }
  0x28   :  { %v71_v5 = vsub.f32 %v67_v2, %v69_v4  ;;  %s154_s8 = scalar_lea.vmem %s88_s7, 256  ;;  %p159_p3 = scmp.lt.s32.totalorder %s88_s7, %s88_s7 }
  0x29   :  { %v72_v6 = vmul.f32 %v70_v3, %v70_v3  ;;  %p155_p2 = scmp.ne.s32.totalorder %s88_s7, %s154_s8  ;;  %p160_p4 = scmp.lt.s32.totalorder %s154_s8, %s154_s8 }
  0x2a   :  { %v73_v7 = vmul.f32 %v71_v5, %v71_v5 }
  0x2b   :  { %80 = vst [vmem:[#allocation7] sm:$0xff] %v72_v6  ;;  %p161_p5 = por %p160_p4, %p159_p3 }
  0x2c   :  { %81 = vst [vmem:[#allocation7 + $0x8] sm:$0xff] %v73_v7 }
  0x2d   :  { %p162_p6 = pnand %p161_p5, %p155_p2 }
  0x2f   :  { %165 = shalt.err (!%p162_p6)
}
  0x30   :  { %s166_s10 = scalar_lea.hbm %s249_s2, 256 }
  0x31   :  { %p167_p7 = scmp.ne.s32.totalorder %s249_s2, %s166_s10  ;;  %p170_p8 = scmp.lt.u32.totalorder %s166_s10, %s249_s2 }
  0x33   :  { %p172_p9 = pnand %p170_p8, %p167_p7 }
  0x35   :  { %175 = shalt.err (!%p172_p9)
}
  0x36   :  { %93 = dma.vmem_to_hbm [thread:$0]  %s88_s7, 256, %s249_s2, [#allocation4], %s183_s19, %s183_s19, %s184_s20  }
  0x37   :  { %180 = dma.done.wait [#allocation4], 256  }
  0x38   :  { %181 = vsyncadd [#allocation4], 4294967040 }
  0x39   :  { %97 = vsyncpa [#allocation3], 1 }
  0x3a   :  { %98 = vsyncpa [#allocation6], 1 }
  0x3b   :  { %99 = vsyncpa [#allocation4], 1 }

</bundles_post_ra>
